<compile_context>
chip_gen: v7x
topology: tpu7x:2x2x1
jax: 0.10.0
libtpu: 0.0.40
codegen_flags: <defaults>
</compile_context>

<pallas_src>
import functools

import jax
import jax.numpy as jnp
from jax import lax
from jax.experimental import pallas as pl
from jax.experimental.pallas import tpu as pltpu

LANE = 128     # TPU vreg lane width
CHUNK = 512    # in-kernel sub-chunk along the batch/lane axis


def _softsign(v):
    # Softsign(x) = x / (1 + |x|); approximate reciprocal runs on the EUP
    # slot, leaving the VALU free for the abs/add/mul.
    return v * pl.reciprocal(1.0 + jnp.abs(v), approx=True)


def _mlp_kernel(x_ref,
                w1_ref, b1_ref,
                w2_ref, b2_ref,
                w3_ref, b3_ref,
                w4_ref, b4_ref,
                o_ref,
                *, batch_major: bool):
    tb = o_ref.shape[-1]
    chunk = min(CHUNK, tb)
    n_chunks = tb // chunk

    def stage(w_ref, b_ref, h):
        return jnp.dot(w_ref[...], h, preferred_element_type=jnp.float32) + b_ref[...]

    def body(c, carry):
        start = pl.multiple_of(c * chunk, chunk)
        if batch_major:
            # x_ref is (tb, in_dim): contract W1 against the slab's last dim
            # (A @ B^T on the MXU, same pattern as attention QK^T) so batch
            # lands on lanes with no explicit activation transpose.
            xc = x_ref[pl.ds(start, chunk), :]                        # (chunk, in)
            h = lax.dot_general(
                w1_ref[...], xc,
                dimension_numbers=(((1,), (1,)), ((), ())),
                preferred_element_type=jnp.float32) + b1_ref[...]     # (hid, chunk)
        else:
            # x_ref is (in_dim, tb): already lane-dense, plain matmul.
            xc = x_ref[:, pl.ds(start, chunk)]                        # (in, chunk)
            h = stage(w1_ref, b1_ref, xc)
        h = _softsign(h)
        h = _softsign(stage(w2_ref, b2_ref, h))
        h = _softsign(stage(w3_ref, b3_ref, h))
        out = stage(w4_ref, b4_ref, h)                                # (out, chunk)
        o_ref[:, pl.ds(start, chunk)] = out.astype(o_ref.dtype)
        return carry

    # fori_loop (not a static Python for) bounds activation live ranges;
    # unroll=True keeps the short fixed trip count visible to the scheduler.
    lax.fori_loop(0, n_chunks, body, 0, unroll=True)


def _pick_tile(batch, tb_req):
    """Batch tile: multiple of 128, big enough to amortize the ~0.35us/step
    grid overhead, capped so the parallel grid keeps >=2 (>=8 for large
    batches) steps for v7x megacore, and a multiple of CHUNK when > CHUNK so
    the in-kernel sub-chunk loop divides evenly."""
    tb = max(LANE, (int(tb_req) // LANE) * LANE)
    eighth = pl.cdiv(pl.cdiv(batch, 8), LANE) * LANE
    half = pl.cdiv(pl.cdiv(batch, 2), LANE) * LANE
    if eighth >= 2 * CHUNK:       # big batch: aim for >= 8 grid steps
        tb = min(tb, eighth)
    else:                         # small/moderate batch: at least 2 steps
        tb = min(tb, max(LANE, half))
    if tb > CHUNK:
        tb = (tb // CHUNK) * CHUNK
    return tb


def small_mlp_forward(x, params, *, tb=4096, batch_major=True):
    """Fused SmallMLP forward.

    x: (B, in_dim) f32 if batch_major else (in_dim, B) f32 (preferred upstream
       layout: fully contiguous, lane-dense input DMA, zero host-side prep).
    params: PyTorch-layout weights w_i (out, in) and biases b_i (out, 1).
    Returns (B, 1) f32.
    """
    if batch_major:
        B, in_dim = x.shape
    else:
        in_dim, B = x.shape
    w1, b1 = params["w1"], params["b1"]
    w2, b2 = params["w2"], params["b2"]
    w3, b3 = params["w3"], params["b3"]
    w4, b4 = params["w4"], params["b4"]
    hidden = w1.shape[0]
    out_dim = w4.shape[0]

    tb_blk = _pick_tile(B, tb)
    grid = (pl.cdiv(B, tb_blk),)   # ragged tail handled by masked writeback

    if batch_major:
        x_spec = pl.BlockSpec((tb_blk, in_dim), lambda i: (i, 0))
    else:
        x_spec = pl.BlockSpec((in_dim, tb_blk), lambda i: (0, i))

    def resident(a):
        # Tiny weights/biases: single block, VMEM-resident across all steps.
        return pl.BlockSpec(a.shape, lambda i: (0, 0))

    flops = 2 * B * (in_dim * hidden + 2 * hidden * hidden + hidden * out_dim)
    w_bytes = 4 * sum(int(p.size) for p in (w1, b1, w2, b2, w3, b3, w4, b4))
    cost = pl.CostEstimate(
        flops=flops,
        transcendentals=3 * hidden * B,                 # EUP approx reciprocals
        bytes_accessed=4 * B * (in_dim + out_dim) + w_bytes,
    )

    out = pl.pallas_call(
        functools.partial(_mlp_kernel, batch_major=batch_major),
        out_shape=jax.ShapeDtypeStruct((out_dim, B), jnp.float32),
        grid=grid,
        in_specs=[x_spec,
                  resident(w1), resident(b1),
                  resident(w2), resident(b2),
                  resident(w3), resident(b3),
                  resident(w4), resident(b4)],
        out_specs=pl.BlockSpec((out_dim, tb_blk), lambda i: (0, i)),
        compiler_params=pltpu.CompilerParams(
            dimension_semantics=("parallel",)),
        cost_estimate=cost,
    )(x, w1, b1, w2, b2, w3, b3, w4, b4)

    return out.T   # (out_dim, B) -> (B, out_dim); out_dim == 1, so a reshape


def init_params(key, in_dim=8, hidden=32, out_dim=1):
    """Deterministic synthetic init (PyTorch-Linear-like uniform bounds).

    Weights in PyTorch layout (out_features, in_features); biases (out, 1).
    """
    dims = [(in_dim, hidden), (hidden, hidden), (hidden, hidden), (hidden, out_dim)]
    params = {}
    for i, (fan_in, fan_out) in enumerate(dims, start=1):
        key, kw, kb = jax.random.split(key, 3)
        bound = 1.0 / (fan_in ** 0.5)
        params[f"w{i}"] = jax.random.uniform(
            kw, (fan_out, fan_in), jnp.float32, minval=-bound, maxval=bound)
        params[f"b{i}"] = jax.random.uniform(
            kb, (fan_out, 1), jnp.float32, minval=-bound, maxval=bound)
    return params


def reference_forward(x, params):
    h = x
    for i in range(1, 4):
        h = h @ params[f"w{i}"].T + params[f"b{i}"].T
        h = h / (1.0 + jnp.abs(h))
    return h @ params["w4"].T + params["b4"].T


if __name__ == "__main__":
    key = jax.random.PRNGKey(0)
    key, kx, kx2 = jax.random.split(key, 3)

    batch, in_dim = 2, 8
    x = jax.random.normal(kx, (batch, in_dim), jnp.float32)
    params = init_params(key, in_dim=in_dim)

    # Small shape, default (B, in_dim) layout.
    out = small_mlp_forward(x, params)
    out = jax.block_until_ready(out)
    ref = reference_forward(x, params)
    assert out.shape == (batch, 1)
    # Tolerance loosened slightly: Softsign uses the EUP approximate reciprocal.
    assert jnp.allclose(out, ref, atol=5e-3, rtol=5e-3)

    # Larger ragged batch: exercises multi-step grid + masked-tail writeback.
    big_b = 1000
    xb = jax.random.normal(kx2, (big_b, in_dim), jnp.float32)
    out_b = jax.block_until_ready(small_mlp_forward(xb, params))
    ref_b = reference_forward(xb, params)
    assert out_b.shape == (big_b, 1)
    assert jnp.allclose(out_b, ref_b, atol=5e-3, rtol=5e-3)

    # Preferred upstream layout (in_dim, B): lane-dense contiguous input DMA.
    out_t = jax.block_until_ready(
        small_mlp_forward(xb.T, params, batch_major=False))
    assert jnp.allclose(out_t, ref_b, atol=5e-3, rtol=5e-3)

    print("KERNEL_OK")
</pallas_src>

<mosaic_0001>
module attributes {stable_mosaic.version = 11 : i64} {
  func.func @_mlp_kernel(%arg0: i32, %arg1: memref<128x8xf32, #tpu.memory_space<vmem>>, %arg2: memref<32x8xf32, #tpu.memory_space<vmem>>, %arg3: memref<32x1xf32, #tpu.memory_space<vmem>>, %arg4: memref<32x32xf32, #tpu.memory_space<vmem>>, %arg5: memref<32x1xf32, #tpu.memory_space<vmem>>, %arg6: memref<32x32xf32, #tpu.memory_space<vmem>>, %arg7: memref<32x1xf32, #tpu.memory_space<vmem>>, %arg8: memref<1x32xf32, #tpu.memory_space<vmem>>, %arg9: memref<1x1xf32, #tpu.memory_space<vmem>>, %arg10: memref<1x128xf32, #tpu.memory_space<vmem>>) attributes {dimension_semantics = [#tpu.dimension_semantics<parallel>], iteration_bounds = array<i64: 1>, scalar_prefetch = 0 : i64, scratch_operands = 0 : i64, tpu.core_type = #tpu.core_type<tc>, window_params = [{transform_indices = @transform_0, window_bounds = array<i64: 128, 8>}, {pipeline_mode = #tpu.pipeline_mode<synchronous>, transform_indices = @transform_1, window_bounds = array<i64: 32, 8>}, {pipeline_mode = #tpu.pipeline_mode<synchronous>, transform_indices = @transform_2, window_bounds = array<i64: 32, 1>}, {pipeline_mode = #tpu.pipeline_mode<synchronous>, transform_indices = @transform_3, window_bounds = array<i64: 32, 32>}, {pipeline_mode = #tpu.pipeline_mode<synchronous>, transform_indices = @transform_4, window_bounds = array<i64: 32, 1>}, {pipeline_mode = #tpu.pipeline_mode<synchronous>, transform_indices = @transform_5, window_bounds = array<i64: 32, 32>}, {pipeline_mode = #tpu.pipeline_mode<synchronous>, transform_indices = @transform_6, window_bounds = array<i64: 32, 1>}, {pipeline_mode = #tpu.pipeline_mode<synchronous>, transform_indices = @transform_7, window_bounds = array<i64: 1, 32>}, {pipeline_mode = #tpu.pipeline_mode<synchronous>, transform_indices = @transform_8, window_bounds = array<i64: 1, 1>}, {transform_indices = @transform_9, window_bounds = array<i64: 1, 128>}]} {
    %c0_i32 = arith.constant 0 : i32
    %c128_i32 = arith.constant 128 : i32
    %0 = arith.muli %c0_i32, %c128_i32 : i32
    %1 = tpu.assume_multiple %0, 128 : i32
    %2 = arith.index_cast %1 : i32 to index
    %c0 = arith.constant 0 : index
    %3 = vector.load %arg1[%2, %c0] : memref<128x8xf32, #tpu.memory_space<vmem>>, vector<128x8xf32>
    %c0_0 = arith.constant 0 : index
    %c0_1 = arith.constant 0 : index
    %4 = vector.load %arg2[%c0_0, %c0_1] : memref<32x8xf32, #tpu.memory_space<vmem>>, vector<32x8xf32>
    %cst = arith.constant dense<0.000000e+00> : vector<32x128xf32>
    %5 = tpu.matmul %4, %3, %cst {dimension_numbers = #tpu.dot_dimension_numbers<[1], [1], [0], [0], [0, 0, 1, 0], [], []>} : vector<32x8xf32>, vector<128x8xf32>, vector<32x128xf32> -> vector<32x128xf32>
    %c0_2 = arith.constant 0 : index
    %c0_3 = arith.constant 0 : index
    %6 = vector.load %arg3[%c0_2, %c0_3] : memref<32x1xf32, #tpu.memory_space<vmem>>, vector<32x1xf32>
    %7 = vector.broadcast %6 : vector<32x1xf32> to vector<32x128xf32>
    %8 = arith.addf %5, %7 : vector<32x128xf32>
    %9 = math.absf %8 : vector<32x128xf32>
    %cst_4 = arith.constant 1.000000e+00 : f32
    %10 = vector.broadcast %cst_4 : f32 to vector<32x128xf32>
    %11 = arith.addf %10, %9 : vector<32x128xf32>
    %12 = tpu.reciprocal %11 {approx = true} : vector<32x128xf32> -> vector<32x128xf32>
    %13 = arith.mulf %8, %12 : vector<32x128xf32>
    %c0_5 = arith.constant 0 : index
    %c0_6 = arith.constant 0 : index
    %14 = vector.load %arg4[%c0_5, %c0_6] : memref<32x32xf32, #tpu.memory_space<vmem>>, vector<32x32xf32>
    %cst_7 = arith.constant dense<0.000000e+00> : vector<32x128xf32>
    %15 = tpu.matmul %14, %13, %cst_7 {dimension_numbers = #tpu.dot_dimension_numbers<[1], [0], [0], [1], [0, 0, 1, 1], [], []>} : vector<32x32xf32>, vector<32x128xf32>, vector<32x128xf32> -> vector<32x128xf32>
    %c0_8 = arith.constant 0 : index
    %c0_9 = arith.constant 0 : index
    %16 = vector.load %arg5[%c0_8, %c0_9] : memref<32x1xf32, #tpu.memory_space<vmem>>, vector<32x1xf32>
    %17 = vector.broadcast %16 : vector<32x1xf32> to vector<32x128xf32>
    %18 = arith.addf %15, %17 : vector<32x128xf32>
    %19 = math.absf %18 : vector<32x128xf32>
    %cst_10 = arith.constant 1.000000e+00 : f32
    %20 = vector.broadcast %cst_10 : f32 to vector<32x128xf32>
    %21 = arith.addf %20, %19 : vector<32x128xf32>
    %22 = tpu.reciprocal %21 {approx = true} : vector<32x128xf32> -> vector<32x128xf32>
    %23 = arith.mulf %18, %22 : vector<32x128xf32>
    %c0_11 = arith.constant 0 : index
    %c0_12 = arith.constant 0 : index
    %24 = vector.load %arg6[%c0_11, %c0_12] : memref<32x32xf32, #tpu.memory_space<vmem>>, vector<32x32xf32>
    %cst_13 = arith.constant dense<0.000000e+00> : vector<32x128xf32>
    %25 = tpu.matmul %24, %23, %cst_13 {dimension_numbers = #tpu.dot_dimension_numbers<[1], [0], [0], [1], [0, 0, 1, 1], [], []>} : vector<32x32xf32>, vector<32x128xf32>, vector<32x128xf32> -> vector<32x128xf32>
    %c0_14 = arith.constant 0 : index
    %c0_15 = arith.constant 0 : index
    %26 = vector.load %arg7[%c0_14, %c0_15] : memref<32x1xf32, #tpu.memory_space<vmem>>, vector<32x1xf32>
    %27 = vector.broadcast %26 : vector<32x1xf32> to vector<32x128xf32>
    %28 = arith.addf %25, %27 : vector<32x128xf32>
    %29 = math.absf %28 : vector<32x128xf32>
    %cst_16 = arith.constant 1.000000e+00 : f32
    %30 = vector.broadcast %cst_16 : f32 to vector<32x128xf32>
    %31 = arith.addf %30, %29 : vector<32x128xf32>
    %32 = tpu.reciprocal %31 {approx = true} : vector<32x128xf32> -> vector<32x128xf32>
    %33 = arith.mulf %28, %32 : vector<32x128xf32>
    %c0_17 = arith.constant 0 : index
    %c0_18 = arith.constant 0 : index
    %34 = vector.load %arg8[%c0_17, %c0_18] : memref<1x32xf32, #tpu.memory_space<vmem>>, vector<1x32xf32>
    %cst_19 = arith.constant dense<0.000000e+00> : vector<1x128xf32>
    %35 = tpu.matmul %34, %33, %cst_19 {dimension_numbers = #tpu.dot_dimension_numbers<[1], [0], [0], [1], [0, 0, 1, 1], [], []>} : vector<1x32xf32>, vector<32x128xf32>, vector<1x128xf32> -> vector<1x128xf32>
    %c0_20 = arith.constant 0 : index
    %c0_21 = arith.constant 0 : index
    %36 = vector.load %arg9[%c0_20, %c0_21] : memref<1x1xf32, #tpu.memory_space<vmem>>, vector<1x1xf32>
    %37 = vector.broadcast %36 : vector<1x1xf32> to vector<1x128xf32>
    %38 = arith.addf %35, %37 : vector<1x128xf32>
    %c0_22 = arith.constant 0 : index
    %39 = arith.index_cast %1 : i32 to index
    %40 = vector.load %arg10[%c0_22, %39] : memref<1x128xf32, #tpu.memory_space<vmem>>, vector<1x128xf32>
    tpu.vector_store %arg10[%c0_22, %39], %38 {strides = array<i32>} : memref<1x128xf32, #tpu.memory_space<vmem>>, vector<1x128xf32>,
    %c1_i32 = arith.constant 1 : i32
    return
  }
  func.func @transform_0(%arg0: i32) -> (i32, i32) {
    %c0_i32 = arith.constant 0 : i32
    %c0_i32_0 = arith.constant 0 : i32
    return %arg0, %c0_i32 : i32, i32
  }
  func.func @transform_1(%arg0: i32) -> (i32, i32) {
    %c0_i32 = arith.constant 0 : i32
    %c0_i32_0 = arith.constant 0 : i32
    %c0_i32_1 = arith.constant 0 : i32
    return %c0_i32, %c0_i32_0 : i32, i32
  }
  func.func @transform_2(%arg0: i32) -> (i32, i32) {
    %c0_i32 = arith.constant 0 : i32
    %c0_i32_0 = arith.constant 0 : i32
    %c0_i32_1 = arith.constant 0 : i32
    return %c0_i32, %c0_i32_0 : i32, i32
  }
  func.func @transform_3(%arg0: i32) -> (i32, i32) {
    %c0_i32 = arith.constant 0 : i32
    %c0_i32_0 = arith.constant 0 : i32
    %c0_i32_1 = arith.constant 0 : i32
    return %c0_i32, %c0_i32_0 : i32, i32
  }
  func.func @transform_4(%arg0: i32) -> (i32, i32) {
    %c0_i32 = arith.constant 0 : i32
    %c0_i32_0 = arith.constant 0 : i32
    %c0_i32_1 = arith.constant 0 : i32
    return %c0_i32, %c0_i32_0 : i32, i32
  }
  func.func @transform_5(%arg0: i32) -> (i32, i32) {
    %c0_i32 = arith.constant 0 : i32
    %c0_i32_0 = arith.constant 0 : i32
    %c0_i32_1 = arith.constant 0 : i32
    return %c0_i32, %c0_i32_0 : i32, i32
  }
  func.func @transform_6(%arg0: i32) -> (i32, i32) {
    %c0_i32 = arith.constant 0 : i32
    %c0_i32_0 = arith.constant 0 : i32
    %c0_i32_1 = arith.constant 0 : i32
    return %c0_i32, %c0_i32_0 : i32, i32
  }
  func.func @transform_7(%arg0: i32) -> (i32, i32) {
    %c0_i32 = arith.constant 0 : i32
    %c0_i32_0 = arith.constant 0 : i32
    %c0_i32_1 = arith.constant 0 : i32
    return %c0_i32, %c0_i32_0 : i32, i32
  }
  func.func @transform_8(%arg0: i32) -> (i32, i32) {
    %c0_i32 = arith.constant 0 : i32
    %c0_i32_0 = arith.constant 0 : i32
    %c0_i32_1 = arith.constant 0 : i32
    return %c0_i32, %c0_i32_0 : i32, i32
  }
  func.func @transform_9(%arg0: i32) -> (i32, i32) {
    %c0_i32 = arith.constant 0 : i32
    %c0_i32_0 = arith.constant 0 : i32
    return %c0_i32, %arg0 : i32, i32
  }
}

</mosaic_0001>

<bundles_post_ra>
// kernel: tpu_custom_call.1
= control target key start
LH: loop header
LB: loop body
LE: loop exit
PB: predicated region body
PF: predicated region fallthrough
CT: control target
= control target key end

     0   :  { %s1139_s0 = inlined_call_operand.vmem [shape: f32[2,8], index: 0, kind: input, shape index: {}]   ;;  %s1140_s1 = inlined_call_operand.vmem [shape: f32[32,8], index: 1, kind: input, shape index: {}]   ;;  %s1141_s2 = inlined_call_operand.vmem [shape: f32[32,1], index: 2, kind: input, shape index: {}]   ;;  %s1142_s3 = inlined_call_operand.vmem [shape: f32[32,32], index: 3, kind: input, shape index: {}]   ;;  %s1143_s4 = inlined_call_operand.vmem [shape: f32[32,1], index: 4, kind: input, shape index: {}]   ;;  %s1144_s5 = inlined_call_operand.vmem [shape: f32[32,32], index: 5, kind: input, shape index: {}]   ;;  %s1145_s6 = inlined_call_operand.vmem [shape: f32[32,1], index: 6, kind: input, shape index: {}]   ;;  %s1146_s7 = inlined_call_operand.vmem [shape: f32[1,32], index: 7, kind: input, shape index: {}]   ;;  %s1147_s8 = inlined_call_operand.<no memory space> [shape: f32[1,1], index: 8, kind: input, shape index: {}]   ;;  %s1148_s9 = inlined_call_operand.hbm [shape: f32[1,2], index: 9, kind: output, shape index: {}]  }
   0x1   :  { %v14_v0 = vstv %s1147_s8 }
   0x2   :  { %15 = vst [vmem:[#allocation2] sm:$0x1] %v14_v0 }
   0x3   :  { %v35_v1 = vld [vmem:[%s1139_s0] sm:$0xff]  ;;  %v36_v2 = vld [vmem:[%s1139_s0 + $0x8] sm:$0xff]  ;;  %vm79_vm0 = vcmask 64512   ;;  %v37_v3 = vld [vmem:[%s1139_s0 + $0x10] sm:$0xff]  ;;  %v895_v7 = vmov 0  }
   0x4   :  { %v770_v4 = vpack.c.bf16 %v36_v2, %v35_v1  ;;  %vm964_vm1 = vmpackc.low %vm79_vm0, %vm79_vm0  ;;  %v38_v6 = vld [vmem:[%s1139_s0 + $0x18] sm:$0xff]  ;;  %845 = vset.pattern.permute.xlu0 %v895_v7  ;;  %846 = vset.pattern.permute.xlu1 %v895_v7  ;;  %v51_v9 = vld [vmem:[%s1140_s1] sm:$0xff] }
   0x5   :  { %v776_v8 = vpack.c.bf16 %v38_v6, %v37_v3  ;;  %v39_v10 = vld [vmem:[%s1139_s0 + $0x20] sm:$0xff]  ;;  %v40_v11 = vld [vmem:[%s1139_s0 + $0x28] sm:$0xff]  ;;  %725 = vmatprep.mubr.msk.f32.mxu0 %vm79_vm0, %v51_v9  ;;  %v57_v13 = vld [vmem:[%s1141_s2 + $0x10] sm:$0xff] }
   0x6   :  { %772 = vmatprep.subr.msk.bf16.mxu0 %vm964_vm1, %v770_v4  ;;  %v55_v12 = vld [vmem:[%s1141_s2] sm:$0xff]  ;;  %71 = vperm.xlu1 %846, %v57_v13   ;;  %v782_v14 = vpack.c.bf16 %v40_v11, %v39_v10  ;;  %v56_v15 = vld [vmem:[%s1141_s2 + $0x8] sm:$0xff]  ;;  %v58_v16 = vld [vmem:[%s1141_s2 + $0x18] sm:$0xff] }
   0x7   :  { %775 = vmatpush3.bf16.xpose.msk.msra.mxu0 %vm964_vm1, %v770_v4  ;;  %61 = vperm.xlu0 %845, %v55_v12  }
   0x8   :  { %778 = vmatprep.subr.msk.bf16.mxu0 %vm964_vm1, %v776_v8 }
   0x9   :  { %16 = vsyncpa [#allocation4], 0  ;;  %v245_v17 = vld [vmem:[%s1143_s4] sm:$0xff]  ;;  %v41_v18 = vld [vmem:[%s1139_s0 + $0x30] sm:$0xff]  ;;  %vm269_vm2 = vcmask 261120   ;;  %vm897_vm3 = vmmov 0  }
   0xa   :  { %76 = vperm.xlu1 %846, %v58_v16   ;;  %v42_v19 = vld [vmem:[%s1139_s0 + $0x38] sm:$0xff]  ;;  %v246_v20 = vld [vmem:[%s1143_s4 + $0x8] sm:$0xff]  ;;  %v247_v22 = vld [vmem:[%s1143_s4 + $0x10] sm:$0xff]  ;;  %s899_s2 = smov [#allocation3]  }
   0xb   :  { %66 = vperm.xlu0 %845, %v56_v15   ;;  %v788_v21 = vpack.c.bf16 %v42_v19, %v41_v18  ;;  %v248_v23 = vld [vmem:[%s1143_s4 + $0x18] sm:$0xff]  ;;  %v387_v24 = vld [vmem:[%s1145_s6] sm:$0xff]  ;;  %v44_v26 = vld [vmem:[%s1139_s0 + $0x48] sm:$0xff]  ;;  %s615_s8 = sshll.u32 %s899_s2, 4  ;;  %s616_s8 = int_to_ptr.vmem [resolvable:$true] %s615_s8 }
   0xc   :  { %v43_v25 = vld [vmem:[%s1139_s0 + $0x40] sm:$0xff]  ;;  %v388_v27 = vld [vmem:[%s1145_s6 + $0x8] sm:$0xff]  ;;  %v389_v29 = vld [vmem:[%s1145_s6 + $0x10] sm:$0xff]  ;;  %s871_s17 = scalar_lea.vmem %s616_s8, 16  ;;  %s875_s18 = scalar_lea.vmem %s616_s8, 32 }
   0xd   :  { %v794_v28 = vpack.c.bf16 %v44_v26, %v43_v25  ;;  %v390_v30 = vld [vmem:[%s1145_s6 + $0x18] sm:$0xff]  ;;  %v525_v31 = vld [vmem:[#allocation2] sm:$0x1]  ;;  %v45_v32 = vld [vmem:[%s1139_s0 + $0x50] sm:$0xff]  ;;  %p872_p0 = scmp.ne.s32.totalorder %s616_s8, %s871_s17  ;;  %p876_p1 = scmp.lt.s32.totalorder %s616_s8, %s616_s8 }
   0xe   :  { %256 = vperm.xlu1 %846, %v246_v20   ;;  %v46_v33 = vld [vmem:[%s1139_s0 + $0x58] sm:$0xff]  ;;  %v47_v35 = vld [vmem:[%s1139_s0 + $0x60] sm:$0xff]  ;;  %v48_v36 = vld [vmem:[%s1139_s0 + $0x68] sm:$0xff]  ;;  %p877_p2 = scmp.lt.s32.totalorder %s875_s18, %s871_s17 }
   0xf   :  { %781 = vmatpush3.bf16.xpose.msk.msra.mxu0 %vm964_vm1, %v776_v8  ;;  %251 = vperm.xlu0 %845, %v245_v17   ;;  %v800_v34 = vpack.c.bf16 %v46_v33, %v45_v32  ;;  %v806_v37 = vpack.c.bf16 %v48_v36, %v47_v35  ;;  %v49_v38 = vld [vmem:[%s1139_s0 + $0x70] sm:$0xff]  ;;  %v50_v39 = vld [vmem:[%s1139_s0 + $0x78] sm:$0xff]  ;;  %v52_v41 = vld [vmem:[%s1140_s1 + $0x8] sm:$0xff] }
  0x10   :  { %784 = vmatprep.subr.msk.bf16.mxu0 %vm964_vm1, %v782_v14  ;;  %v812_v40 = vpack.c.bf16 %v50_v39, %v49_v38  ;;  %v53_v42 = vld [vmem:[%s1140_s1 + $0x10] sm:$0xff]  ;;  %v54_v43 = vld [vmem:[%s1140_s1 + $0x18] sm:$0xff]  ;;  %v241_v44 = vld [vmem:[%s1142_s3] sm:$0xff]  ;;  %p878_p3 = por %p877_p2, %p876_p1 }
  0x11   :  { %739 = vmatprep.mubr.msk.f32.mxu1 %vm269_vm2, %v241_v44  ;;  %v242_v11 = vld [vmem:[%s1142_s3 + $0x8] sm:$0xff]  ;;  %v243_v12 = vld [vmem:[%s1142_s3 + $0x10] sm:$0xff]  ;;  %v244_v13 = vld [vmem:[%s1142_s3 + $0x18] sm:$0xff] }
  0x12   :  { %266 = vperm.xlu1 %846, %v248_v23   ;;  %p879_p4 = pnand %p878_p3, %p872_p0 }
  0x13   :  { %261 = vperm.xlu0 %845, %v247_v22  }
  0x16   :  { %398 = vperm.xlu1 %846, %v388_v27  }
  0x17   :  { %787 = vmatpush3.bf16.xpose.msk.msra.mxu0 %vm964_vm1, %v782_v14  ;;  %393 = vperm.xlu0 %845, %v387_v24   ;;  %v383_v14 = vld [vmem:[%s1144_s5] sm:$0xff] }
  0x18   :  { %790 = vmatprep.subr.msk.bf16.mxu0 %vm964_vm1, %v788_v21 }
  0x1a   :  { %408 = vperm.xlu1 %846, %v390_v30  }
  0x1b   :  { %403 = vperm.xlu0 %845, %v389_v29  }
  0x1f   :  { %793 = vmatpush3.bf16.xpose.msk.msra.mxu0 %vm964_vm1, %v788_v21  ;;  %528 = vperm.xlu0 %845, %v525_v31  }
  0x20   :  { %796 = vmatprep.subr.msk.bf16.mxu0 %vm964_vm1, %v794_v28 }
  0x27   :  { %799 = vmatpush3.bf16.xpose.msk.msra.mxu0 %vm964_vm1, %v794_v28 }
  0x28   :  { %802 = vmatprep.subr.msk.bf16.mxu0 %vm964_vm1, %v800_v34 }
  0x2f   :  { %805 = vmatpush3.bf16.xpose.msk.msra.mxu0 %vm964_vm1, %v800_v34 }
  0x30   :  { %808 = vmatprep.subr.msk.bf16.mxu0 %vm964_vm1, %v806_v37 }
  0x37   :  { %811 = vmatpush3.bf16.xpose.msk.msra.mxu0 %vm964_vm1, %v806_v37 }
  0x38   :  { %814 = vmatprep.subr.msk.bf16.mxu0 %vm964_vm1, %v812_v40 }
  0x3f   :  { %817 = vmatpush3.bf16.xpose.msk.msra.mxu0 %vm964_vm1, %v812_v40 }
  0x46   :  { %726 = vmatmul.mubr.msk.f32.vlgmr.msra.gmra.mrb[0].mxu0 %vm79_vm0, %v52_v41 }
  0x47   :  { %728 = vmatprep.mubr.msk.f32.mxu0 %vm79_vm0, %v53_v42 }
  0x4a   :  { %729 = vmatmul.mubr.msk.f32.gmra.mrb[2].mxu0 %vm79_vm0, %v54_v43 }
  0x85   :  { %v72_v46 = vpop.permute.xlu1 %71 }
  0x86   :  { %v62_v45 = vpop.permute.xlu0 %61 }
  0x89   :  { %v77_v53 = vpop.permute.xlu1 %76 }
  0x8a   :  { %v67_v47 = vpop.permute.xlu0 %66 }
  0x8d   :  { %v257_v15 = vpop.permute.xlu1 %256 }
  0x8e   :  { %v252_v16 = vpop.permute.xlu0 %251 }
  0x91   :  { %v267_v22 = vpop.permute.xlu1 %266 }
  0x92   :  { %v262_v25 = vpop.permute.xlu0 %261 }
 0x119   :  { %v727_v48 = vpop.f32.mrb[0].mxu0 }
 0x11a   :  { %v212_v49 = vadd.f32 %v727_v48, %v67_v47  ;;  %v206_v50 = vpop.f32.mrb[1].mxu0  ;;  %v386_v47 = vld [vmem:[%s1144_s5 + $0x18] sm:$0xff]  ;;  %v896_v48 = vmov 0.0|0.0  }
 0x11b   :  { %v207_v51 = vadd.f32 %v206_v50, %v62_v45  ;;  %v384_v45 = vld [vmem:[%s1144_s5 + $0x8] sm:$0xff]  ;;  %v399_v50 = vpop.permute.xlu1 %398 }
 0x11c   :  { %v226_v52 = vand.u32 2147483647, %v212_v49 }
 0x11d   :  { %v225_v54 = vand.u32 2147483647, %v207_v51  ;;  %v730_v55 = vpop.f32.mrb[2].mxu0 }
 0x11e   :  { %v230_v56 = vadd.f32 1.0, %v226_v52  ;;  %v222_v57 = vadd.f32 %v730_v55, %v77_v53  ;;  %v216_v58 = vpop.f32.mrb[3].mxu0 }
 0x11f   :  { %v229_v59 = vadd.f32 1.0, %v225_v54  ;;  %v217_v60 = vadd.f32 %v216_v58, %v72_v46  ;;  %v385_v46 = vld [vmem:[%s1144_s5 + $0x10] sm:$0xff] }
 0x120   :  { %847 = vrcp.f32 %v230_v56  ;;  %v228_v61 = vand.u32 2147483647, %v222_v57 }
 0x121   :  { %849 = vrcp.f32 %v229_v59  ;;  %v227_v62 = vand.u32 2147483647, %v217_v60 }
 0x122   :  { %v232_v63 = vadd.f32 1.0, %v228_v61 }
 0x123   :  { %v231_v0 = vadd.f32 1.0, %v227_v62 }
 0x124   :  { %851 = vrcp.f32 %v232_v63 }
 0x125   :  { %853 = vrcp.f32 %v231_v0 }
 0x12a   :  { %v848_v1 = vpop.eup %847 }
 0x12b   :  { %v850_v2 = vpop.eup %849  ;;  %v238_v3 = vmul.f32 %v848_v1, %v212_v49  ;;  %v898_v49 = vmov 0.0  }
 0x12c   :  { %v237_v4 = vmul.f32 %v850_v2, %v207_v51  ;;  %v394_v51 = vpop.permute.xlu0 %393 }
 0x12e   :  { %v852_v5 = vpop.eup %851  ;;  %v818_v6 = vpack.c.bf16 %v238_v3, %v237_v4 }
 0x12f   :  { %v854_v7 = vpop.eup %853  ;;  %v240_v8 = vmul.f32 %v852_v5, %v222_v57  ;;  %v409_v57 = vpop.permute.xlu1 %408 }
 0x130   :  { %v239_v9 = vmul.f32 %v854_v7, %v217_v60  ;;  %819 = vmatprep.subr.bf16.mxu1 %v818_v6  ;;  %v404_v60 = vpop.permute.xlu0 %403 }
 0x131   :  { %821 = vmatpush3.bf16.msra.mxu1 %v818_v6 }
 0x132   :  { %v822_v10 = vpack.c.bf16 %v240_v8, %v239_v9 }
 0x134   :  { %823 = vmatprep.subr.bf16.mxu1 %v822_v10 }
 0x135   :  { %825 = vmatpush3.bf16.msra.mxu1 %v822_v10 }
 0x138   :  { %740 = vmatmul.mubr.msk.f32.vlgmr.msra.gmra.mrb[0].mxu1 %vm269_vm2, %v242_v11 }
 0x139   :  { %742 = vmatprep.mubr.msk.f32.mxu1 %vm269_vm2, %v243_v12 }
 0x13c   :  { %743 = vmatmul.mubr.msk.f32.gmra.mrb[2].mxu1 %vm269_vm2, %v244_v13 }
 0x13d   :  { %753 = vmatprep.mubr.msk.f32.mxu1 %vm269_vm2, %v383_v14 }
 0x20b   :  { %v741_v17 = vpop.f32.mrb[0].mxu1 }
 0x20c   :  { %v354_v18 = vadd.f32 %v741_v17, %v257_v15  ;;  %v348_v19 = vpop.f32.mrb[1].mxu1  ;;  %v531_v17 = vlaneseq }
 0x20d   :  { %v349_v20 = vadd.f32 %v348_v19, %v252_v16  ;;  %v524_v16 = vld [vmem:[%s1146_s7] sm:$0x1] }
 0x20e   :  { %v368_v21 = vand.u32 2147483647, %v354_v18 }
 0x20f   :  { %v367_v23 = vand.u32 2147483647, %v349_v20  ;;  %v744_v24 = vpop.f32.mrb[2].mxu1 }
 0x210   :  { %v372_v26 = vadd.f32 1.0, %v368_v21  ;;  %v364_v27 = vadd.f32 %v744_v24, %v267_v22  ;;  %v358_v28 = vpop.f32.mrb[3].mxu1 }
 0x211   :  { %v371_v29 = vadd.f32 1.0, %v367_v23  ;;  %v359_v30 = vadd.f32 %v358_v28, %v262_v25 }
 0x212   :  { %855 = vrcp.f32 %v372_v26  ;;  %v370_v31 = vand.u32 2147483647, %v364_v27 }
 0x213   :  { %857 = vrcp.f32 %v371_v29  ;;  %v369_v32 = vand.u32 2147483647, %v359_v30 }
 0x214   :  { %v374_v33 = vadd.f32 1.0, %v370_v31 }
 0x215   :  { %v373_v34 = vadd.f32 1.0, %v369_v32 }
 0x216   :  { %859 = vrcp.f32 %v374_v33 }
 0x217   :  { %861 = vrcp.f32 %v373_v34 }
 0x21c   :  { %v856_v35 = vpop.eup %855 }
 0x21d   :  { %v858_v36 = vpop.eup %857  ;;  %v380_v37 = vmul.f32 %v856_v35, %v354_v18  ;;  %v532_v18 = vshrl.u32 %v531_v17, 7 }
 0x21e   :  { %v379_v38 = vmul.f32 %v858_v36, %v349_v20  ;;  %v529_v20 = vpop.permute.xlu0 %528 }
 0x21f   :  { %v533_v19 = vsub.s32 0, %v532_v18 }
 0x220   :  { %v860_v39 = vpop.eup %859  ;;  %v826_v40 = vpack.c.bf16 %v380_v37, %v379_v38 }
 0x221   :  { %v862_v41 = vpop.eup %861  ;;  %v382_v42 = vmul.f32 %v860_v39, %v364_v27  ;;  %v534_v21 = vrot.slane %v529_v20, %v533_v19 }
 0x222   :  { %v381_v43 = vmul.f32 %v862_v41, %v359_v30  ;;  %827 = vmatprep.subr.bf16.mxu1 %v826_v40 }
 0x223   :  { %829 = vmatpush3.bf16.msra.mxu1 %v826_v40 }
 0x224   :  { %v830_v44 = vpack.c.bf16 %v382_v42, %v381_v43 }
 0x226   :  { %831 = vmatprep.subr.bf16.mxu1 %v830_v44 }
 0x227   :  { %833 = vmatpush3.bf16.msra.mxu1 %v830_v44 }
 0x228   :  { %834 = vmatprep.subr.bf16.mxu1 %v896_v48 }
 0x22a   :  { %754 = vmatmul.mubr.msk.f32.vlgmr.msra.gmra.mrb[4].mxu1 %vm269_vm2, %v384_v45 }
 0x22b   :  { %756 = vmatprep.mubr.msk.f32.mxu1 %vm269_vm2, %v385_v46 }
 0x22e   :  { %757 = vmatmul.mubr.msk.f32.gmra.mrb[6].mxu1 %vm269_vm2, %v386_v47 }
 0x22f   :  { %767 = vmatprep.mubr.msk.f32.mxu1 %vm897_vm3, %v898_v49 }
 0x2fd   :  { %v755_v52 = vpop.f32.mrb[4].mxu1 }
 0x2fe   :  { %v495_v53 = vadd.f32 %v755_v52, %v399_v50  ;;  %v489_v54 = vpop.f32.mrb[5].mxu1 }
 0x2ff   :  { %v490_v55 = vadd.f32 %v489_v54, %v394_v51 }
 0x300   :  { %v509_v56 = vand.u32 2147483647, %v495_v53 }
 0x301   :  { %v508_v58 = vand.u32 2147483647, %v490_v55  ;;  %v758_v59 = vpop.f32.mrb[6].mxu1 }
 0x302   :  { %v513_v61 = vadd.f32 1.0, %v509_v56  ;;  %v505_v62 = vadd.f32 %v758_v59, %v409_v57  ;;  %v499_v63 = vpop.f32.mrb[7].mxu1 }
 0x303   :  { %v512_v0 = vadd.f32 1.0, %v508_v58  ;;  %v500_v1 = vadd.f32 %v499_v63, %v404_v60 }
 0x304   :  { %863 = vrcp.f32 %v513_v61  ;;  %v511_v2 = vand.u32 2147483647, %v505_v62 }
 0x305   :  { %865 = vrcp.f32 %v512_v0  ;;  %v510_v3 = vand.u32 2147483647, %v500_v1 }
 0x306   :  { %v515_v4 = vadd.f32 1.0, %v511_v2 }
 0x307   :  { %v514_v5 = vadd.f32 1.0, %v510_v3 }
 0x308   :  { %867 = vrcp.f32 %v515_v4 }
 0x309   :  { %869 = vrcp.f32 %v514_v5 }
 0x30e   :  { %v864_v6 = vpop.eup %863 }
 0x30f   :  { %v866_v7 = vpop.eup %865  ;;  %v521_v8 = vmul.f32 %v864_v6, %v495_v53 }
 0x310   :  { %v520_v9 = vmul.f32 %v866_v7, %v490_v55 }
 0x312   :  { %v868_v10 = vpop.eup %867  ;;  %v835_v11 = vpack.c.bf16 %v521_v8, %v520_v9 }
 0x313   :  { %v870_v12 = vpop.eup %869  ;;  %v523_v13 = vmul.f32 %v868_v10, %v505_v62 }
 0x314   :  { %v522_v14 = vmul.f32 %v870_v12, %v500_v1  ;;  %836 = vmatpush3.bf16.msra.mxu1 %v835_v11 }
 0x315   :  { %837 = vmatprep.subr.bf16.mxu1 %v896_v48 }
 0x316   :  { %v838_v15 = vpack.c.bf16 %v523_v13, %v522_v14 }
 0x318   :  { %839 = vmatpush3.bf16.msra.mxu1 %v838_v15 }
 0x31b   :  { %768 = vmatmul.mubr.msk.f32.vlgmr.msra.gmra.mrb[8].mxu1 %vm269_vm2, %v524_v16 }
 0x3ee   :  { %v604_v22 = vpop.f32.mrb[8].mxu1 }
 0x3ef   :  { %v605_v23 = vadd.f32 %v604_v22, %v534_v21  ;;  %v769_v24 = vpop.f32.mrb[9].mxu1 }
 0x3f1   :  { %608 = vst [vmem:[#allocation3] sm:$0x1] %v605_v23 }
 0x3f2   :  { %882 = shalt.err (!%p879_p4)
}
 0x3f3   :  { %s883_s20 = scalar_lea.hbm %s1148_s9, 16 }
 0x3f4   :  { %p884_p5 = scmp.ne.s32.totalorder %s1148_s9, %s883_s20  ;;  %p887_p6 = scmp.lt.u32.totalorder %s883_s20, %s1148_s9 }
 0x3f6   :  { %p889_p7 = pnand %p887_p6, %p884_p5 }
 0x3f8   :  { %892 = shalt.err (!%p889_p7)
}
 0x3f9   :  { %618 = dma.vmem_to_hbm [thread:$0]  %s616_s8, 16, %s1148_s9, [#allocation4]  }
 0x3fa   :  { %893 = dma.done.wait [#allocation4], 16  }
 0x3fb   :  { %894 = vsyncadd [#allocation4], 4294967280 }
 0x3fc   :  { %622 = vsyncpa [#allocation4], 1 }

</bundles_post_ra>
